<compile_context>
chip_gen: v7x
topology: tpu7x:2x2x1
jax: 0.10.0
libtpu: 0.0.40
codegen_flags: <defaults>
</compile_context>

<pallas_src>
import jax
import jax.numpy as jnp
from jax.experimental import pallas as pl
from jax.experimental.pallas import tpu as pltpu

IN_FEATURES = 128
OUT_FEATURES = 10


def linear_kernel(x_ref, w_ref, b_ref, o_ref):
    # Single-tile matmul on the MXU (f32 accumulate), bias add on the VPU.
    acc = jnp.dot(x_ref[...], w_ref[...], preferred_element_type=jnp.float32)
    o_ref[...] = (acc + b_ref[...]).astype(o_ref.dtype)


def _cost(B, K, N):
    # Advisory estimate of the actual work / HBM traffic (no padding anywhere).
    return pl.CostEstimate(
        flops=2 * B * K * N,
        transcendentals=0,
        bytes_accessed=4 * (B * K + K * N + N + B * N),
    )


def _choose_tile_b(B, small_threshold=512, max_tile=1024):
    """None -> whole-problem-in-VMEM path; else batch-tile size for the grid path.

    For the grid path we aim for >=2 programs (so the 'parallel' axis engages
    both v7x TensorCores) by targeting ~B/2 rows per tile, rounded up to a
    multiple of 8 (sublane), capped at max_tile rows (~0.5 MiB f32 input tile).
    """
    if B <= small_threshold:
        return None
    half = (((B + 1) // 2) + 7) // 8 * 8
    return min(max_tile, half)


def linear_pallas(x, w_t, b2):
    """x: (B, K) f32, w_t: (K, N) f32, b2: (1, N) f32 -> (B, N) f32."""
    B, K = x.shape
    _, N = w_t.shape
    tile_b = _choose_tile_b(B)

    if tile_b is None:
        # Small-batch path: no grid, no index maps — whole problem resident in
        # VMEM (B <= 512 -> a few hundred KiB, far under every scoped limit).
        return pl.pallas_call(
            linear_kernel,
            out_shape=jax.ShapeDtypeStruct((B, N), x.dtype),
            in_specs=[
                pl.BlockSpec(memory_space=pltpu.MemorySpace.VMEM),
                pl.BlockSpec(memory_space=pltpu.MemorySpace.VMEM),
                pl.BlockSpec(memory_space=pltpu.MemorySpace.VMEM),
            ],
            out_specs=pl.BlockSpec(memory_space=pltpu.MemorySpace.VMEM),
            cost_estimate=_cost(B, K, N),
        )(x, w_t, b2)

    # Streaming path: x tiles stream (double-buffered) while the small weight
    # and bias blocks stay resident in VMEM.  cdiv grid handles any B (the
    # partial final block is masked by Pallas); batch axis is "parallel" so
    # v7x shards it across both TensorCores.
    grid = (pl.cdiv(B, tile_b),)
    return pl.pallas_call(
        linear_kernel,
        out_shape=jax.ShapeDtypeStruct((B, N), x.dtype),
        grid=grid,
        in_specs=[
            pl.BlockSpec((tile_b, K), lambda i: (i, 0)),
            pl.BlockSpec((K, N), lambda i: (0, 0)),
            pl.BlockSpec((1, N), lambda i: (0, 0)),
        ],
        out_specs=pl.BlockSpec((tile_b, N), lambda i: (i, 0)),
        compiler_params=pltpu.CompilerParams(
            dimension_semantics=("parallel",)
        ),
        cost_estimate=_cost(B, K, N),
    )(x, w_t, b2)


class MyModelPallas:
    """Pallas port of MyModel: forward(x) = nn.Linear(128, 10)(x).

    Weight layout conversion (PyTorch (OUT, IN) -> (IN, OUT)) is done exactly
    once at construction, so per-call forward launches a single Pallas call.
    """

    def __init__(self, w, b):
        # w: (OUT, IN) PyTorch layout; b: (OUT,)
        self.w_t = jnp.transpose(jnp.asarray(w, jnp.float32))          # (IN, OUT)
        self.b2 = jnp.asarray(b, jnp.float32).reshape(1, -1)           # (1, OUT)

    def __call__(self, x):
        return linear_pallas(x, self.w_t, self.b2)


if __name__ == "__main__":
    key = jax.random.PRNGKey(0)
    kx, kw, kb, kx2, kx3 = jax.random.split(key, 5)

    IN, OUT = IN_FEATURES, OUT_FEATURES

    # Deterministic params (mimics PyTorch uniform(-1/sqrt(in), 1/sqrt(in)))
    bound = 1.0 / (IN ** 0.5)
    w = jax.random.uniform(kw, (OUT, IN), jnp.float32, -bound, bound)  # PyTorch layout
    b = jax.random.uniform(kb, (OUT,), jnp.float32, -bound, bound)

    model = MyModelPallas(w, b)

    # Small-batch path (module's typical usage; no-grid, whole problem in VMEM).
    B = 8
    x = jax.random.normal(kx, (B, IN), jnp.float32)
    y = model(x)
    jax.block_until_ready(y)
    y_ref = x @ w.T + b
    assert y.shape == (B, OUT)
    assert jnp.allclose(y, y_ref, atol=1e-5, rtol=1e-5)

    # Streaming path, evenly divisible grid (2 programs -> both v7x TCs).
    B2 = 2048
    x2 = jax.random.normal(kx2, (B2, IN), jnp.float32)
    y2 = model(x2)
    jax.block_until_ready(y2)
    y2_ref = x2 @ w.T + b
    assert y2.shape == (B2, OUT)
    assert jnp.allclose(y2, y2_ref, atol=2e-5, rtol=1e-5)

    # Streaming path with a partial final block (cdiv grid, masked boundary).
    B3 = 1000
    x3 = jax.random.normal(kx3, (B3, IN), jnp.float32)
    y3 = model(x3)
    jax.block_until_ready(y3)
    y3_ref = x3 @ w.T + b
    assert y3.shape == (B3, OUT)
    assert jnp.allclose(y3, y3_ref, atol=2e-5, rtol=1e-5)

    print("KERNEL_OK")
</pallas_src>

<mosaic_0001>
module attributes {stable_mosaic.version = 11 : i64} {
  func.func @linear_kernel(%arg0: memref<8x128xf32, #tpu.memory_space<vmem>>, %arg1: memref<128x10xf32, #tpu.memory_space<vmem>>, %arg2: memref<1x10xf32, #tpu.memory_space<vmem>>, %arg3: memref<8x10xf32, #tpu.memory_space<vmem>>) attributes {dimension_semantics = [], scalar_prefetch = 0 : i64, scratch_operands = 0 : i64, tpu.core_type = #tpu.core_type<tc>} {
    %c0 = arith.constant 0 : index
    %c0_0 = arith.constant 0 : index
    %0 = vector.load %arg0[%c0, %c0_0] : memref<8x128xf32, #tpu.memory_space<vmem>>, vector<8x128xf32>
    %c0_1 = arith.constant 0 : index
    %c0_2 = arith.constant 0 : index
    %1 = vector.load %arg1[%c0_1, %c0_2] : memref<128x10xf32, #tpu.memory_space<vmem>>, vector<128x10xf32>
    %cst = arith.constant dense<0.000000e+00> : vector<8x10xf32>
    %2 = tpu.matmul %0, %1, %cst {dimension_numbers = #tpu.dot_dimension_numbers<[1], [0], [0], [1], [0, 0, 1, 1], [], []>} : vector<8x128xf32>, vector<128x10xf32>, vector<8x10xf32> -> vector<8x10xf32>
    %c0_3 = arith.constant 0 : index
    %c0_4 = arith.constant 0 : index
    %3 = vector.load %arg2[%c0_3, %c0_4] : memref<1x10xf32, #tpu.memory_space<vmem>>, vector<1x10xf32>
    %4 = vector.broadcast %3 : vector<1x10xf32> to vector<8x10xf32>
    %5 = arith.addf %2, %4 : vector<8x10xf32>
    %c0_5 = arith.constant 0 : index
    %c0_6 = arith.constant 0 : index
    %6 = vector.load %arg3[%c0_5, %c0_6] : memref<8x10xf32, #tpu.memory_space<vmem>>, vector<8x10xf32>
    tpu.vector_store %arg3[%c0_5, %c0_6], %5 {strides = array<i32>} : memref<8x10xf32, #tpu.memory_space<vmem>>, vector<8x10xf32>,
    return
  }
}

</mosaic_0001>

<bundles_post_ra>
// kernel: tpu_custom_call.1
= control target key start
LH: loop header
LB: loop body
LE: loop exit
PB: predicated region body
PF: predicated region fallthrough
CT: control target
= control target key end

     0   :  { %v230_v3 = vmov 0.0|0.0   ;;  %vm231_vm0 = vmmov 0   ;;  %v232_v6 = vmov 0.0   ;;  %s320_s0 = inlined_call_operand.vmem [shape: f32[8,128], index: 0, kind: input, shape index: {}]   ;;  %s321_s1 = inlined_call_operand.vmem [shape: f32[128,10], index: 1, kind: input, shape index: {}]   ;;  %s322_s2 = inlined_call_operand.vmem [shape: f32[1,10], index: 2, kind: input, shape index: {}]   ;;  %s323_s3 = inlined_call_operand.hbm [shape: f32[8,10], index: 3, kind: output, shape index: {}]  }
   0x1   :  { %v16_v0 = vld [vmem:[%s321_s1] sm:$0xff]  ;;  %v17_v1 = vld [vmem:[%s321_s1 + $0x8] sm:$0xff]  ;;  %v18_v2 = vld [vmem:[%s321_s1 + $0x10] sm:$0xff]  ;;  %178 = vmatprep.subr.bf16.mxu0 %v230_v3  ;;  %175 = vmatprep.mubr.msk.f32.mxu0 %vm231_vm0, %v232_v6 }
   0x2   :  { %v179_v4 = vpack.c.bf16 %v17_v1, %v16_v0  ;;  %v19_v5 = vld [vmem:[%s321_s1 + $0x18] sm:$0xff]  ;;  %v20_v8 = vld [vmem:[%s321_s1 + $0x20] sm:$0xff]  ;;  %v21_v9 = vld [vmem:[%s321_s1 + $0x28] sm:$0xff] }
   0x3   :  { %v182_v7 = vpack.c.bf16 %v19_v5, %v18_v2 }
   0x4   :  { %180 = vmatpush3.bf16.msra.mxu0 %v179_v4 }
   0x5   :  { %181 = vmatprep.subr.bf16.mxu0 %v230_v3 }
   0x6   :  { %8 = vsyncpa [#allocation3], 0  ;;  %v185_v10 = vpack.c.bf16 %v21_v9, %v20_v8  ;;  %v22_v11 = vld [vmem:[%s321_s1 + $0x30] sm:$0xff]  ;;  %v23_v12 = vld [vmem:[%s321_s1 + $0x38] sm:$0xff]  ;;  %s233_s21 = smov [#allocation2]   ;;  %vm109_vm1 = vcmask 80896  }
   0x7   :  { %v188_v13 = vpack.c.bf16 %v23_v12, %v22_v11  ;;  %v24_v14 = vld [vmem:[%s321_s1 + $0x40] sm:$0xff]  ;;  %v25_v15 = vld [vmem:[%s321_s1 + $0x48] sm:$0xff]  ;;  %v26_v17 = vld [vmem:[%s321_s1 + $0x50] sm:$0xff]  ;;  %s117_s22 = sshll.u32 %s233_s21, 4  ;;  %s118_s22 = int_to_ptr.vmem [resolvable:$true] %s117_s22 }
   0x8   :  { %183 = vmatpush3.bf16.msra.mxu0 %v182_v7  ;;  %v191_v16 = vpack.c.bf16 %v25_v15, %v24_v14  ;;  %v27_v18 = vld [vmem:[%s321_s1 + $0x58] sm:$0xff]  ;;  %v28_v20 = vld [vmem:[%s321_s1 + $0x60] sm:$0xff]  ;;  %v29_v21 = vld [vmem:[%s321_s1 + $0x68] sm:$0xff]  ;;  %p211_p1 = scmp.lt.s32.totalorder %s118_s22, %s118_s22 }
   0x9   :  { %184 = vmatprep.subr.bf16.mxu0 %v230_v3  ;;  %v194_v19 = vpack.c.bf16 %v27_v18, %v26_v17  ;;  %v197_v22 = vpack.c.bf16 %v29_v21, %v28_v20  ;;  %v30_v23 = vld [vmem:[%s321_s1 + $0x70] sm:$0xff]  ;;  %v31_v24 = vld [vmem:[%s321_s1 + $0x78] sm:$0xff]  ;;  %v15_v26 = vld [vmem:[%s320_s0] sm:$0xff]  ;;  %s206_s1 = scalar_lea.vmem %s118_s22, 128 }
   0xa   :  { %v200_v25 = vpack.c.bf16 %v31_v24, %v30_v23  ;;  %v125_v27 = vld [vmem:[%s322_s2] ss:$0 sm:$0xff]  ;;  %p207_p0 = scmp.ne.s32.totalorder %s118_s22, %s206_s1  ;;  %p212_p2 = scmp.lt.s32.totalorder %s206_s1, %s206_s1 }
   0xc   :  { %186 = vmatpush3.bf16.msra.mxu0 %v185_v10  ;;  %p213_p3 = por %p212_p2, %p211_p1 }
   0xd   :  { %187 = vmatprep.subr.bf16.mxu0 %v230_v3 }
   0xe   :  { %p214_p4 = pnand %p213_p3, %p207_p0 }
  0x10   :  { %189 = vmatpush3.bf16.msra.mxu0 %v188_v13 }
  0x11   :  { %190 = vmatprep.subr.bf16.mxu0 %v230_v3 }
  0x14   :  { %192 = vmatpush3.bf16.msra.mxu0 %v191_v16 }
  0x15   :  { %193 = vmatprep.subr.bf16.mxu0 %v230_v3 }
  0x18   :  { %195 = vmatpush3.bf16.msra.mxu0 %v194_v19 }
  0x19   :  { %196 = vmatprep.subr.bf16.mxu0 %v230_v3 }
  0x1c   :  { %198 = vmatpush3.bf16.msra.mxu0 %v197_v22 }
  0x1d   :  { %199 = vmatprep.subr.bf16.mxu0 %v230_v3 }
  0x20   :  { %201 = vmatpush3.bf16.msra.mxu0 %v200_v25 }
  0x23   :  { %176 = vmatmul.mubr.f32.vlgmr.msra.gmra.mrb[0].mxu0 %v15_v26 }
  0xf6   :  { %v105_v28 = vpop.f32.mrb[0].mxu0 }
  0xf7   :  { %v106_v29 = vadd.f32 %v125_v27, %v105_v28  ;;  %v177_v30 = vpop.f32.mrb[1].mxu0 }
  0xf9   :  { %110 = vst.msk [vmem:[#allocation2] sm:$0xff] %vm109_vm1, %v106_v29 }
  0xfa   :  { %217 = shalt.err (!%p214_p4)
}
  0xfb   :  { %s218_s24 = scalar_lea.hbm %s323_s3, 128 }
  0xfc   :  { %p219_p5 = scmp.ne.s32.totalorder %s323_s3, %s218_s24  ;;  %p222_p6 = scmp.lt.u32.totalorder %s218_s24, %s323_s3 }
  0xfe   :  { %p224_p7 = pnand %p222_p6, %p219_p5 }
 0x100   :  { %227 = shalt.err (!%p224_p7)
}
 0x101   :  { %120 = dma.vmem_to_hbm [thread:$0]  %s118_s22, 128, %s323_s3, [#allocation3]  }
 0x102   :  { %228 = dma.done.wait [#allocation3], 128  }
 0x103   :  { %229 = vsyncadd [#allocation3], 4294967168 }
 0x104   :  { %124 = vsyncpa [#allocation3], 1 }

</bundles_post_ra>
